<compile_context>
chip_gen: v7x
topology: tpu7x:2x2x1
jax: 0.10.0
libtpu: 0.0.40
codegen_flags: <defaults>
</compile_context>

<pallas_src>
import functools

import jax
import jax.numpy as jnp
from jax.experimental import pallas as pl
from jax.experimental.pallas import tpu as pltpu


_MEL_BUFFER_BUDGET = 24 << 20  # 3 streams x 2 pipeline buffers target (bytes)


# --------------------------------------------------------------------------- #
# Planning helpers (host side, static).
# --------------------------------------------------------------------------- #
def _cdiv(a, b):
    return -(-a // b)


def _roundup(a, m):
    return _cdiv(a, m) * m


def _device_kind():
    try:
        return jax.devices()[0].device_kind.lower()
    except Exception:  # pragma: no cover - defensive
        return ""


def _vmem_limit_bytes(kind, mel_buf_bytes):
    # Generation-aware scoped-VMEM override: v7x has 64 MiB physical VMEM per
    # TC (cap ~48 MiB); v5e/v6e have 128 MiB (v5e's default scoped is 16 MiB,
    # so raising it is what unlocks the big tiles there).
    cap = (48 << 20) if "v7" in kind else (96 << 20)
    return int(min(cap, max(32 << 20, mel_buf_bytes + (12 << 20))))


def _pick_group(batch, f, itemsize):
    """Sublane-packing factor G: view mel as (B*G, F/G) with B*G a multiple of
    the vreg sublane count (8 for f32, 16 for bf16, 32 for int8)."""
    sub = {1: 32, 2: 16}.get(int(itemsize), 8)
    if batch <= 0 or batch % sub == 0:
        return 1
    fallback = 1
    for g in range(2, 65):
        if f % g:
            continue
        if (batch * g) % sub == 0:
            return g
        if fallback == 1 and batch * g >= sub:
            fallback = g
    return fallback


def _plan_tiles(f_packed, rows, itemsize, n_par, tile_override):
    """Pick (tile_f, tiles_per_slice, n_slices).

    Guarantees: tiles are 128-aligned (or a single full-extent block), the
    feature range is fully covered, no tile is entirely out of bounds, and at
    most the globally-last tile is ragged.
    """
    if tile_override is not None:
        t_budget = max(128, (int(tile_override) // 128) * 128)
    else:
        t_budget = _MEL_BUFFER_BUDGET // (3 * 2 * max(rows, 1) * max(itemsize, 1))
        t_budget = max(128, (t_budget // 128) * 128)
    n_par = max(1, int(n_par))
    while n_par >= 1:
        n_steps = _cdiv(f_packed, t_budget)
        tiles_per_slice = max(1, _cdiv(n_steps, n_par))
        if tiles_per_slice == 1 and f_packed >= 4 * 128 * n_par:
            tiles_per_slice = 2  # >= 2 steps/slice so DMA and compute overlap
        n_total = n_par * tiles_per_slice
        if n_total == 1:
            return f_packed, 1, 1  # single full-extent block
        tile = _roundup(_cdiv(f_packed, n_total), 128)
        while n_total > n_par and (n_total - 1) * tile >= f_packed:
            n_total -= n_par
            tile = _roundup(_cdiv(f_packed, n_total), 128)
        if n_total == 1:
            return f_packed, 1, 1
        if (n_total - 1) * tile < f_packed:
            return tile, n_total // n_par, n_par
        n_par -= 1  # problem too small to split across cores
    return f_packed, 1, 1


def _spread_rows(x, group):
    """(B, T) -> (B*group, T) with example b at row b*group, zeros elsewhere,
    so the small tensors share the packed-row example indexing of the mels."""
    if group == 1:
        return x
    b, t = x.shape
    return jnp.pad(x[:, None, :], ((0, 0), (0, group - 1), (0, 0))).reshape(b * group, t)


# --------------------------------------------------------------------------- #
# Kernel 1: streaming partial sums.
# --------------------------------------------------------------------------- #
def _fs2_stream_kernel(mel_ref, melp_ref, melt_ref,
                       dp_ref, dt_ref, pp_ref, pt_ref, ep_ref, et_ref,
                       part_ref, mel_acc, melp_acc,
                       *, rows, tile_f, f_packed, n_total):
    p = pl.program_id(0)
    k = pl.program_id(1)
    nk = pl.num_programs(1)
    n_par = pl.num_programs(0)

    @pl.when(k == 0)
    def _prologue():
        mel_acc[...] = jnp.zeros_like(mel_acc)
        melp_acc[...] = jnp.zeros_like(melp_acc)

        # Small duration/pitch/energy MAE row-sums, hidden under the first
        # tile's DMA (review item 8).  Only slice p == 0 contributes.
        def abs_rows(pr, tr):
            d = pr[...].astype(jnp.float32) - tr[...].astype(jnp.float32)
            return jnp.sum(jnp.abs(d), axis=-1, keepdims=True)  # (rows, 1)

        lane = jax.lax.broadcasted_iota(jnp.int32, (rows, 8), 1)
        small = jnp.where(lane == 2, abs_rows(dp_ref, dt_ref), 0.0)
        small = jnp.where(lane == 3, abs_rows(pp_ref, pt_ref), small)
        small = jnp.where(lane == 4, abs_rows(ep_ref, et_ref), small)
        part_ref[...] = small * (p == 0).astype(jnp.float32)

    def accumulate(mask=None):
        tgt = melt_ref[...].astype(jnp.float32)
        dm = mel_ref[...].astype(jnp.float32) - tgt
        dq = melp_ref[...].astype(jnp.float32) - tgt
        if mask is not None:
            dm = jnp.where(mask, dm, 0.0)
            dq = jnp.where(mask, dq, 0.0)
        mel_acc[...] += jnp.sum(dm * dm, axis=-1, keepdims=True)
        melp_acc[...] += jnp.sum(dq * dq, axis=-1, keepdims=True)

    # Only the globally-last feature tile can be partially out of bounds; mask
    # it there and keep the hot loop unmasked (review item 6).  The unmasked
    # OOB lanes contain garbage which the jnp.where safely discards.
    last_valid = f_packed - (n_total - 1) * tile_f  # static python int
    if last_valid < tile_f:
        is_last = jnp.logical_and(p == n_par - 1, k == nk - 1)

        @pl.when(jnp.logical_not(is_last))
        def _full_tile():
            accumulate()

        @pl.when(is_last)
        def _ragged_tile():
            lane = jax.lax.broadcasted_iota(jnp.int32, (rows, tile_f), 1)
            accumulate(lane < last_valid)
    else:
        accumulate()

    @pl.when(k == nk - 1)
    def _epilogue():
        lane = jax.lax.broadcasted_iota(jnp.int32, (rows, 8), 1)
        out = part_ref[...]
        out = jnp.where(lane == 0, mel_acc[...], out)
        out = jnp.where(lane == 1, melp_acc[...], out)
        part_ref[...] = out


# --------------------------------------------------------------------------- #
# Kernel 2: combine partials + batch-prefix normalisation (torch semantics).
# --------------------------------------------------------------------------- #
def _fs2_combine_kernel(part_ref, ex_ref, mel_len_ref, src_len_ref, out_ref,
                        *, batch, total_rows, f_mel, d_feats, p_feats, e_feats):
    part = part_ref[...]                                   # (R, 8) fp32
    ex = ex_ref[...]                                       # (R, 1) int32: example id per row
    # torch's pred[:l] slices along the *batch* dim and clips to B.
    mel_clip = jnp.minimum(mel_len_ref[...], batch)        # (1, B)
    src_clip = jnp.minimum(src_len_ref[...], batch)
    mask_mel = ex < mel_clip                               # (R, B)
    mask_src = ex < src_clip
    mel_den = mel_clip.astype(jnp.float32)
    src_den = src_clip.astype(jnp.float32)

    lane8 = jax.lax.broadcasted_iota(jnp.int32, (total_rows, 8), 1)

    def prefix_mean(col, mask, den, feats):
        rows_col = jnp.sum(jnp.where(lane8 == col, part, 0.0),
                           axis=1, keepdims=True)                       # (R, 1)
        contrib = jnp.sum(jnp.where(mask, rows_col, 0.0),
                          axis=0, keepdims=True)                        # (1, B)
        # NaN when a length is zero -- matches torch.mean over an empty slice.
        return jnp.sum(contrib / (den * float(feats))) * (1.0 / batch)

    mel_loss = prefix_mean(0, mask_mel, mel_den, f_mel)
    melp_loss = prefix_mean(1, mask_mel, mel_den, f_mel)
    d_loss = prefix_mean(2, mask_src, src_den, d_feats)
    p_loss = prefix_mean(3, mask_mel, mel_den, p_feats)
    e_loss = prefix_mean(4, mask_mel, mel_den, e_feats)

    out_lane = jax.lax.broadcasted_iota(jnp.int32, (1, 8), 1)
    out = jnp.where(out_lane == 0, mel_loss, 0.0)
    out = jnp.where(out_lane == 1, melp_loss, out)
    out = jnp.where(out_lane == 2, d_loss, out)
    out = jnp.where(out_lane == 3, p_loss, out)
    out = jnp.where(out_lane == 4, e_loss, out)
    out_ref[...] = out.astype(jnp.float32)


# --------------------------------------------------------------------------- #
# Wrapper.
# --------------------------------------------------------------------------- #
def fastspeech2_loss(d_predicted, d_target, p_predicted, p_target,
                     e_predicted, e_target, mel, mel_postnet, mel_target,
                     src_length, mel_length, *, tile_f=None, num_slices=None):
    B, T_mel, n_mel = mel.shape
    T_src = d_predicted.shape[1]
    F = T_mel * n_mel
    itemsize = jnp.dtype(mel.dtype).itemsize
    kind = _device_kind()

    # Item 5: sublane packing -- view mel streams as (B*G, F/G).
    G = _pick_group(B, F, itemsize)
    rows = B * G
    f_packed = F // G

    # Item 4: one feature slice per TensorCore on v7x (2 TCs); one elsewhere.
    if num_slices is None:
        num_slices = 2 if "v7" in kind else 1
    if num_slices > 1 and rows % 8 != 0:
        num_slices = 1  # keep the per-slice (rows, 8) output block legal

    tile, tiles_per_slice, n_par = _plan_tiles(f_packed, rows, itemsize,
                                               num_slices, tile_f)
    n_total = n_par * tiles_per_slice
    total_rows = n_par * rows

    # Native dtypes throughout -- no fp32 copies of the big tensors in HBM.
    mel2 = mel.reshape(rows, f_packed)
    melp2 = mel_postnet.reshape(rows, f_packed)
    melt2 = mel_target.reshape(rows, f_packed)
    dpad = _spread_rows(d_predicted, G)
    dtp = _spread_rows(d_target, G)
    ppad = _spread_rows(p_predicted, G)
    ptp = _spread_rows(p_target, G)
    epad = _spread_rows(e_predicted, G)
    etp = _spread_rows(e_target, G)
    mel_len_row = mel_length.reshape(1, B).astype(jnp.int32)
    src_len_row = src_length.reshape(1, B).astype(jnp.int32)
    # Example index per (slice-stacked) packed row, precomputed on the host so
    # the combine kernel needs no vector integer div/mod.
    ex_ids = jnp.tile(jnp.repeat(jnp.arange(B, dtype=jnp.int32), G),
                      n_par).reshape(total_rows, 1)

    mel_buf_bytes = 3 * 2 * rows * tile * itemsize
    vmem_limit = _vmem_limit_bytes(kind, mel_buf_bytes)

    stream = functools.partial(_fs2_stream_kernel, rows=rows, tile_f=tile,
                               f_packed=f_packed, n_total=n_total)
    combine = functools.partial(_fs2_combine_kernel, batch=B,
                                total_rows=total_rows, f_mel=F,
                                d_feats=T_src, p_feats=T_mel, e_feats=T_mel)

    mel_spec = pl.BlockSpec((rows, tile),
                            lambda p, k: (0, p * tiles_per_slice + k))

    def resident(shape):
        return pl.BlockSpec(shape, lambda p, k: (0, 0))

    partials = pl.pallas_call(
        stream,
        out_shape=jax.ShapeDtypeStruct((total_rows, 8), jnp.float32),
        grid=(n_par, tiles_per_slice),
        in_specs=[
            mel_spec, mel_spec, mel_spec,
            resident((rows, T_src)), resident((rows, T_src)),
            resident((rows, T_mel)), resident((rows, T_mel)),
            resident((rows, T_mel)), resident((rows, T_mel)),
        ],
        out_specs=pl.BlockSpec((rows, 8), lambda p, k: (p, 0)),
        scratch_shapes=[pltpu.VMEM((rows, 1), jnp.float32),
                        pltpu.VMEM((rows, 1), jnp.float32)],
        compiler_params=pltpu.CompilerParams(
            dimension_semantics=("parallel", "arbitrary"),
            vmem_limit_bytes=vmem_limit),
    )(mel2, melp2, melt2, dpad, dtp, ppad, ptp, epad, etp)

    out = pl.pallas_call(
        combine,
        out_shape=jax.ShapeDtypeStruct((1, 8), jnp.float32),
        grid=(1,),
        in_specs=[
            pl.BlockSpec((total_rows, 8), lambda i: (0, 0)),
            pl.BlockSpec((total_rows, 1), lambda i: (0, 0)),
            pl.BlockSpec((1, B), lambda i: (0, 0)),
            pl.BlockSpec((1, B), lambda i: (0, 0)),
        ],
        out_specs=pl.BlockSpec((1, 8), lambda i: (0, 0)),
        compiler_params=pltpu.CompilerParams(
            dimension_semantics=("arbitrary",)),
    )(partials, ex_ids, mel_len_row, src_len_row)

    return out[0, 0], out[0, 1], out[0, 2], out[0, 3], out[0, 4]


# ------------------------- pure-JAX reference (torch semantics) --------------
def _ref_loss(pred, tgt, lens, squared):
    B = tgt.shape[0]
    tot = jnp.float32(0.0)
    for b in range(B):
        l = int(lens[b])
        d = pred[:l].astype(jnp.float32) - tgt[:l].astype(jnp.float32)
        m = d * d if squared else jnp.abs(d)
        tot = tot + jnp.mean(m)
    return tot / B


if __name__ == "__main__":
    key = jax.random.PRNGKey(0)
    # F = T_mel * n_mel = 640 -> packed to (8, 160); tile_f=128 makes the last
    # tile ragged, and num_slices=2 exercises the per-slice partial outputs.
    B, T_src, T_mel, n_mel = 2, 8, 32, 20
    ks = jax.random.split(key, 9)

    d_predicted = jax.random.normal(ks[0], (B, T_src), jnp.float32)
    d_target = jax.random.randint(ks[1], (B, T_src), 0, 5, jnp.int32)
    p_predicted = jax.random.normal(ks[2], (B, T_mel), jnp.float32)
    p_target = jax.random.normal(ks[3], (B, T_mel), jnp.float32)
    e_predicted = jax.random.normal(ks[4], (B, T_mel), jnp.float32)
    e_target = jax.random.normal(ks[5], (B, T_mel), jnp.float32)
    mel = jax.random.normal(ks[6], (B, T_mel, n_mel), jnp.float32)
    mel_postnet = jax.random.normal(ks[7], (B, T_mel, n_mel), jnp.float32)
    mel_target = jax.random.normal(ks[8], (B, T_mel, n_mel), jnp.float32)
    # lengths may exceed B; torch's batch-dim slicing clips implicitly
    src_length = jnp.array([3, 1], dtype=jnp.int32)
    mel_length = jnp.array([2, 1], dtype=jnp.int32)

    args = (d_predicted, d_target, p_predicted, p_target, e_predicted,
            e_target, mel, mel_postnet, mel_target, src_length, mel_length)

    # Default plan (single full-extent block on v5e/v6e, 2 slices on v7x).
    out_default = jax.block_until_ready(fastspeech2_loss(*args))
    # Small explicit tiles: multi-step grid with masked ragged last tile.
    out_tiled = jax.block_until_ready(fastspeech2_loss(*args, tile_f=128))
    # Explicit 2-slice split (runs sequentially on single-core chips).
    out_split = jax.block_until_ready(
        fastspeech2_loss(*args, tile_f=128, num_slices=2))

    ref = (
        _ref_loss(mel, mel_target, mel_length, squared=True),
        _ref_loss(mel_postnet, mel_target, mel_length, squared=True),
        _ref_loss(d_predicted, d_target.astype(jnp.float32), src_length,
                  squared=False),
        _ref_loss(p_predicted, p_target, mel_length, squared=False),
        _ref_loss(e_predicted, e_target, mel_length, squared=False),
    )
    for got_a, got_b, got_c, want in zip(out_default, out_tiled, out_split, ref):
        assert jnp.allclose(got_a, want, rtol=1e-5, atol=1e-6), (got_a, want)
        assert jnp.allclose(got_b, want, rtol=1e-5, atol=1e-6), (got_b, want)
        assert jnp.allclose(got_c, want, rtol=1e-5, atol=1e-6), (got_c, want)

    print("KERNEL_OK")
</pallas_src>

<mosaic_0001>
module attributes {stable_mosaic.version = 11 : i64} {
  func.func @_fs2_stream_kernel(%arg0: i32, %arg1: i32, %arg2: memref<8x160xf32, #tpu.memory_space<vmem>>, %arg3: memref<8x160xf32, #tpu.memory_space<vmem>>, %arg4: memref<8x160xf32, #tpu.memory_space<vmem>>, %arg5: memref<8x8xf32, #tpu.memory_space<vmem>>, %arg6: memref<8x8xi32, #tpu.memory_space<vmem>>, %arg7: memref<8x32xf32, #tpu.memory_space<vmem>>, %arg8: memref<8x32xf32, #tpu.memory_space<vmem>>, %arg9: memref<8x32xf32, #tpu.memory_space<vmem>>, %arg10: memref<8x32xf32, #tpu.memory_space<vmem>>, %arg11: memref<8x8xf32, #tpu.memory_space<vmem>>, %arg12: memref<8x1xf32, #tpu.memory_space<vmem>>, %arg13: memref<8x1xf32, #tpu.memory_space<vmem>>) attributes {dimension_semantics = [#tpu.dimension_semantics<parallel>, #tpu.dimension_semantics<arbitrary>], iteration_bounds = array<i64: 1, 1>, scalar_prefetch = 0 : i64, scratch_operands = 2 : i64, tpu.core_type = #tpu.core_type<tc>, window_params = [{transform_indices = @transform_0, window_bounds = array<i64: 8, 160>}, {transform_indices = @transform_1, window_bounds = array<i64: 8, 160>}, {transform_indices = @transform_2, window_bounds = array<i64: 8, 160>}, {pipeline_mode = #tpu.pipeline_mode<synchronous>, transform_indices = @transform_3, window_bounds = array<i64: 8, 8>}, {pipeline_mode = #tpu.pipeline_mode<synchronous>, transform_indices = @transform_4, window_bounds = array<i64: 8, 8>}, {pipeline_mode = #tpu.pipeline_mode<synchronous>, transform_indices = @transform_5, window_bounds = array<i64: 8, 32>}, {pipeline_mode = #tpu.pipeline_mode<synchronous>, transform_indices = @transform_6, window_bounds = array<i64: 8, 32>}, {pipeline_mode = #tpu.pipeline_mode<synchronous>, transform_indices = @transform_7, window_bounds = array<i64: 8, 32>}, {pipeline_mode = #tpu.pipeline_mode<synchronous>, transform_indices = @transform_8, window_bounds = array<i64: 8, 32>}, {transform_indices = @transform_9, window_bounds = array<i64: 8, 8>}]} {
    %c0_i32 = arith.constant 0 : i32
    %0 = arith.cmpi eq, %arg1, %c0_i32 : i32
    %1 = arith.extui %0 : i1 to i32
    %c0_i32_0 = arith.constant 0 : i32
    %2 = arith.cmpi ne, %1, %c0_i32_0 : i32
    scf.if %2 {
      %cst_17 = arith.constant 0.000000e+00 : f32
      %23 = vector.broadcast %cst_17 : f32 to vector<8x1xf32>
      %c0_18 = arith.constant 0 : index
      %c0_19 = arith.constant 0 : index
      %24 = vector.load %arg12[%c0_18, %c0_19] : memref<8x1xf32, #tpu.memory_space<vmem>>, vector<8x1xf32>
      tpu.vector_store %arg12[%c0_18, %c0_19], %23 {strides = array<i32>} : memref<8x1xf32, #tpu.memory_space<vmem>>, vector<8x1xf32>,
      %cst_20 = arith.constant 0.000000e+00 : f32
      %25 = vector.broadcast %cst_20 : f32 to vector<8x1xf32>
      %c0_21 = arith.constant 0 : index
      %c0_22 = arith.constant 0 : index
      %26 = vector.load %arg13[%c0_21, %c0_22] : memref<8x1xf32, #tpu.memory_space<vmem>>, vector<8x1xf32>
      tpu.vector_store %arg13[%c0_21, %c0_22], %25 {strides = array<i32>} : memref<8x1xf32, #tpu.memory_space<vmem>>, vector<8x1xf32>,
      %27 = tpu.iota {dimensions = array<i32: 1>} : vector<8x8xi32>
      %c2_i32 = arith.constant 2 : i32
      %28 = vector.broadcast %c2_i32 : i32 to vector<8x8xi32>
      %29 = arith.cmpi eq, %27, %28 : vector<8x8xi32>
      %c0_23 = arith.constant 0 : index
      %c0_24 = arith.constant 0 : index
      %30 = vector.load %arg5[%c0_23, %c0_24] : memref<8x8xf32, #tpu.memory_space<vmem>>, vector<8x8xf32>
      %c0_25 = arith.constant 0 : index
      %c0_26 = arith.constant 0 : index
      %31 = vector.load %arg6[%c0_25, %c0_26] : memref<8x8xi32, #tpu.memory_space<vmem>>, vector<8x8xi32>
      %32 = arith.sitofp %31 : vector<8x8xi32> to vector<8x8xf32>
      %33 = arith.subf %30, %32 : vector<8x8xf32>
      %34 = math.absf %33 : vector<8x8xf32>
      %cst_27 = arith.constant dense<0.000000e+00> : vector<8xf32>
      %35 = vector.multi_reduction <add>, %34, %cst_27 [1] : vector<8x8xf32> to vector<8xf32>
      %36 = vector.shape_cast %35 : vector<8xf32> to vector<8x1xf32>
      %cst_28 = arith.constant 0.000000e+00 : f32
      %37 = vector.shape_cast %36 : vector<8x1xf32> to vector<8x1xf32>
      %38 = vector.broadcast %37 : vector<8x1xf32> to vector<8x8xf32>
      %39 = vector.broadcast %cst_28 : f32 to vector<8x8xf32>
      %40 = arith.select %29, %38, %39 : vector<8x8xi1>, vector<8x8xf32>
      %c3_i32 = arith.constant 3 : i32
      %41 = vector.broadcast %c3_i32 : i32 to vector<8x8xi32>
      %42 = arith.cmpi eq, %27, %41 : vector<8x8xi32>
      %c0_29 = arith.constant 0 : index
      %c0_30 = arith.constant 0 : index
      %43 = vector.load %arg7[%c0_29, %c0_30] : memref<8x32xf32, #tpu.memory_space<vmem>>, vector<8x32xf32>
      %c0_31 = arith.constant 0 : index
      %c0_32 = arith.constant 0 : index
      %44 = vector.load %arg8[%c0_31, %c0_32] : memref<8x32xf32, #tpu.memory_space<vmem>>, vector<8x32xf32>
      %45 = arith.subf %43, %44 : vector<8x32xf32>
      %46 = math.absf %45 : vector<8x32xf32>
      %cst_33 = arith.constant dense<0.000000e+00> : vector<8xf32>
      %47 = vector.multi_reduction <add>, %46, %cst_33 [1] : vector<8x32xf32> to vector<8xf32>
      %48 = vector.shape_cast %47 : vector<8xf32> to vector<8x1xf32>
      %49 = vector.shape_cast %48 : vector<8x1xf32> to vector<8x1xf32>
      %50 = vector.broadcast %49 : vector<8x1xf32> to vector<8x8xf32>
      %51 = arith.select %42, %50, %40 : vector<8x8xi1>, vector<8x8xf32>
      %c4_i32 = arith.constant 4 : i32
      %52 = vector.broadcast %c4_i32 : i32 to vector<8x8xi32>
      %53 = arith.cmpi eq, %27, %52 : vector<8x8xi32>
      %c0_34 = arith.constant 0 : index
      %c0_35 = arith.constant 0 : index
      %54 = vector.load %arg9[%c0_34, %c0_35] : memref<8x32xf32, #tpu.memory_space<vmem>>, vector<8x32xf32>
      %c0_36 = arith.constant 0 : index
      %c0_37 = arith.constant 0 : index
      %55 = vector.load %arg10[%c0_36, %c0_37] : memref<8x32xf32, #tpu.memory_space<vmem>>, vector<8x32xf32>
      %56 = arith.subf %54, %55 : vector<8x32xf32>
      %57 = math.absf %56 : vector<8x32xf32>
      %cst_38 = arith.constant dense<0.000000e+00> : vector<8xf32>
      %58 = vector.multi_reduction <add>, %57, %cst_38 [1] : vector<8x32xf32> to vector<8xf32>
      %59 = vector.shape_cast %58 : vector<8xf32> to vector<8x1xf32>
      %60 = vector.shape_cast %59 : vector<8x1xf32> to vector<8x1xf32>
      %61 = vector.broadcast %60 : vector<8x1xf32> to vector<8x8xf32>
      %62 = arith.select %53, %61, %51 : vector<8x8xi1>, vector<8x8xf32>
      %c0_i32_39 = arith.constant 0 : i32
      %63 = arith.cmpi eq, %arg0, %c0_i32_39 : i32
      %64 = arith.extui %63 : i1 to i32
      %65 = arith.sitofp %64 : i32 to f32
      %66 = vector.broadcast %65 : f32 to vector<8x8xf32>
      %67 = arith.mulf %62, %66 : vector<8x8xf32>
      %c0_40 = arith.constant 0 : index
      %c0_41 = arith.constant 0 : index
      %68 = vector.load %arg11[%c0_40, %c0_41] : memref<8x8xf32, #tpu.memory_space<vmem>>, vector<8x8xf32>
      tpu.vector_store %arg11[%c0_40, %c0_41], %67 {strides = array<i32>} : memref<8x8xf32, #tpu.memory_space<vmem>>, vector<8x8xf32>,
    } else {
    }
    %c0 = arith.constant 0 : index
    %c0_1 = arith.constant 0 : index
    %3 = vector.load %arg4[%c0, %c0_1] : memref<8x160xf32, #tpu.memory_space<vmem>>, vector<8x160xf32>
    %c0_2 = arith.constant 0 : index
    %c0_3 = arith.constant 0 : index
    %4 = vector.load %arg2[%c0_2, %c0_3] : memref<8x160xf32, #tpu.memory_space<vmem>>, vector<8x160xf32>
    %5 = arith.subf %4, %3 : vector<8x160xf32>
    %c0_4 = arith.constant 0 : index
    %c0_5 = arith.constant 0 : index
    %6 = vector.load %arg3[%c0_4, %c0_5] : memref<8x160xf32, #tpu.memory_space<vmem>>, vector<8x160xf32>
    %7 = arith.subf %6, %3 : vector<8x160xf32>
    %c0_6 = arith.constant 0 : index
    %c0_7 = arith.constant 0 : index
    %8 = vector.load %arg12[%c0_6, %c0_7] : memref<8x1xf32, #tpu.memory_space<vmem>>, vector<8x1xf32>
    %9 = arith.mulf %5, %5 : vector<8x160xf32>
    %cst = arith.constant dense<0.000000e+00> : vector<8xf32>
    %10 = vector.multi_reduction <add>, %9, %cst [1] : vector<8x160xf32> to vector<8xf32>
    %11 = vector.shape_cast %10 : vector<8xf32> to vector<8x1xf32>
    %12 = arith.addf %8, %11 : vector<8x1xf32>
    %c0_8 = arith.constant 0 : index
    %c0_9 = arith.constant 0 : index
    %13 = vector.load %arg12[%c0_8, %c0_9] : memref<8x1xf32, #tpu.memory_space<vmem>>, vector<8x1xf32>
    tpu.vector_store %arg12[%c0_8, %c0_9], %12 {strides = array<i32>} : memref<8x1xf32, #tpu.memory_space<vmem>>, vector<8x1xf32>,
    %c0_10 = arith.constant 0 : index
    %c0_11 = arith.constant 0 : index
    %14 = vector.load %arg13[%c0_10, %c0_11] : memref<8x1xf32, #tpu.memory_space<vmem>>, vector<8x1xf32>
    %15 = arith.mulf %7, %7 : vector<8x160xf32>
    %cst_12 = arith.constant dense<0.000000e+00> : vector<8xf32>
    %16 = vector.multi_reduction <add>, %15, %cst_12 [1] : vector<8x160xf32> to vector<8xf32>
    %17 = vector.shape_cast %16 : vector<8xf32> to vector<8x1xf32>
    %18 = arith.addf %14, %17 : vector<8x1xf32>
    %c0_13 = arith.constant 0 : index
    %c0_14 = arith.constant 0 : index
    %19 = vector.load %arg13[%c0_13, %c0_14] : memref<8x1xf32, #tpu.memory_space<vmem>>, vector<8x1xf32>
    tpu.vector_store %arg13[%c0_13, %c0_14], %18 {strides = array<i32>} : memref<8x1xf32, #tpu.memory_space<vmem>>, vector<8x1xf32>,
    %c0_i32_15 = arith.constant 0 : i32
    %20 = arith.cmpi eq, %arg1, %c0_i32_15 : i32
    %21 = arith.extui %20 : i1 to i32
    %c0_i32_16 = arith.constant 0 : i32
    %22 = arith.cmpi ne, %21, %c0_i32_16 : i32
    scf.if %22 {
      %23 = tpu.iota {dimensions = array<i32: 1>} : vector<8x8xi32>
      %c0_17 = arith.constant 0 : index
      %c0_18 = arith.constant 0 : index
      %24 = vector.load %arg11[%c0_17, %c0_18] : memref<8x8xf32, #tpu.memory_space<vmem>>, vector<8x8xf32>
      %c0_i32_19 = arith.constant 0 : i32
      %25 = vector.broadcast %c0_i32_19 : i32 to vector<8x8xi32>
      %26 = arith.cmpi eq, %23, %25 : vector<8x8xi32>
      %c0_20 = arith.constant 0 : index
      %c0_21 = arith.constant 0 : index
      %27 = vector.load %arg12[%c0_20, %c0_21] : memref<8x1xf32, #tpu.memory_space<vmem>>, vector<8x1xf32>
      %28 = vector.shape_cast %27 : vector<8x1xf32> to vector<8x1xf32>
      %29 = vector.broadcast %28 : vector<8x1xf32> to vector<8x8xf32>
      %30 = arith.select %26, %29, %24 : vector<8x8xi1>, vector<8x8xf32>
      %c1_i32 = arith.constant 1 : i32
      %31 = vector.broadcast %c1_i32 : i32 to vector<8x8xi32>
      %32 = arith.cmpi eq, %23, %31 : vector<8x8xi32>
      %c0_22 = arith.constant 0 : index
      %c0_23 = arith.constant 0 : index
      %33 = vector.load %arg13[%c0_22, %c0_23] : memref<8x1xf32, #tpu.memory_space<vmem>>, vector<8x1xf32>
      %34 = vector.shape_cast %33 : vector<8x1xf32> to vector<8x1xf32>
      %35 = vector.broadcast %34 : vector<8x1xf32> to vector<8x8xf32>
      %36 = arith.select %32, %35, %30 : vector<8x8xi1>, vector<8x8xf32>
      %c0_24 = arith.constant 0 : index
      %c0_25 = arith.constant 0 : index
      %37 = vector.load %arg11[%c0_24, %c0_25] : memref<8x8xf32, #tpu.memory_space<vmem>>, vector<8x8xf32>
      tpu.vector_store %arg11[%c0_24, %c0_25], %36 {strides = array<i32>} : memref<8x8xf32, #tpu.memory_space<vmem>>, vector<8x8xf32>,
    } else {
    }
    return
  }
  func.func @transform_0(%arg0: i32, %arg1: i32) -> (i32, i32) {
    %c1_i32 = arith.constant 1 : i32
    %0 = arith.muli %arg0, %c1_i32 : i32
    %1 = arith.addi %0, %arg1 : i32
    %c0_i32 = arith.constant 0 : i32
    %c0_i32_0 = arith.constant 0 : i32
    return %c0_i32, %1 : i32, i32
  }
  func.func @transform_1(%arg0: i32, %arg1: i32) -> (i32, i32) {
    %c1_i32 = arith.constant 1 : i32
    %0 = arith.muli %arg0, %c1_i32 : i32
    %1 = arith.addi %0, %arg1 : i32
    %c0_i32 = arith.constant 0 : i32
    %c0_i32_0 = arith.constant 0 : i32
    return %c0_i32, %1 : i32, i32
  }
  func.func @transform_2(%arg0: i32, %arg1: i32) -> (i32, i32) {
    %c1_i32 = arith.constant 1 : i32
    %0 = arith.muli %arg0, %c1_i32 : i32
    %1 = arith.addi %0, %arg1 : i32
    %c0_i32 = arith.constant 0 : i32
    %c0_i32_0 = arith.constant 0 : i32
    return %c0_i32, %1 : i32, i32
  }
  func.func @transform_3(%arg0: i32, %arg1: i32) -> (i32, i32) {
    %c0_i32 = arith.constant 0 : i32
    %c0_i32_0 = arith.constant 0 : i32
    %c0_i32_1 = arith.constant 0 : i32
    return %c0_i32, %c0_i32_0 : i32, i32
  }
  func.func @transform_4(%arg0: i32, %arg1: i32) -> (i32, i32) {
    %c0_i32 = arith.constant 0 : i32
    %c0_i32_0 = arith.constant 0 : i32
    %c0_i32_1 = arith.constant 0 : i32
    return %c0_i32, %c0_i32_0 : i32, i32
  }
  func.func @transform_5(%arg0: i32, %arg1: i32) -> (i32, i32) {
    %c0_i32 = arith.constant 0 : i32
    %c0_i32_0 = arith.constant 0 : i32
    %c0_i32_1 = arith.constant 0 : i32
    return %c0_i32, %c0_i32_0 : i32, i32
  }
  func.func @transform_6(%arg0: i32, %arg1: i32) -> (i32, i32) {
    %c0_i32 = arith.constant 0 : i32
    %c0_i32_0 = arith.constant 0 : i32
    %c0_i32_1 = arith.constant 0 : i32
    return %c0_i32, %c0_i32_0 : i32, i32
  }
  func.func @transform_7(%arg0: i32, %arg1: i32) -> (i32, i32) {
    %c0_i32 = arith.constant 0 : i32
    %c0_i32_0 = arith.constant 0 : i32
    %c0_i32_1 = arith.constant 0 : i32
    return %c0_i32, %c0_i32_0 : i32, i32
  }
  func.func @transform_8(%arg0: i32, %arg1: i32) -> (i32, i32) {
    %c0_i32 = arith.constant 0 : i32
    %c0_i32_0 = arith.constant 0 : i32
    %c0_i32_1 = arith.constant 0 : i32
    return %c0_i32, %c0_i32_0 : i32, i32
  }
  func.func @transform_9(%arg0: i32, %arg1: i32) -> (i32, i32) {
    %c0_i32 = arith.constant 0 : i32
    %c0_i32_0 = arith.constant 0 : i32
    return %arg0, %c0_i32 : i32, i32
  }
}

</mosaic_0001>

<bundles_post_ra>
// kernel: tpu_custom_call.1
= control target key start
LH: loop header
LB: loop body
LE: loop exit
PB: predicated region body
PF: predicated region fallthrough
CT: control target
= control target key end

     0   :  { %14 = vsyncpa [#allocation5], 0  ;;  %s576_s0 = inlined_call_operand.hbm [shape: f32[8,160], index: 0, kind: input, shape index: {}]   ;;  %s577_s1 = inlined_call_operand.hbm [shape: f32[8,160], index: 1, kind: input, shape index: {}]   ;;  %s578_s2 = inlined_call_operand.hbm [shape: f32[8,160], index: 2, kind: input, shape index: {}]   ;;  %s579_s3 = inlined_call_operand.vmem [shape: f32[8,8], index: 3, kind: input, shape index: {}]   ;;  %s580_s4 = inlined_call_operand.hbm [shape: s32[8,8], index: 4, kind: input, shape index: {}]   ;;  %s581_s5 = inlined_call_operand.vmem [shape: f32[8,32], index: 5, kind: input, shape index: {}]   ;;  %s582_s6 = inlined_call_operand.hbm [shape: f32[8,32], index: 6, kind: input, shape index: {}]   ;;  %s583_s7 = inlined_call_operand.vmem [shape: f32[8,32], index: 7, kind: input, shape index: {}]   ;;  %s584_s8 = inlined_call_operand.hbm [shape: f32[8,32], index: 8, kind: input, shape index: {}]   ;;  %s585_s9 = inlined_call_operand.hbm [shape: f32[8,8], index: 9, kind: output, shape index: {}]  }
   0x1   :  { %15 = vsyncpa [#allocation8], 0 }
   0x2   :  { %16 = vsyncpa [#allocation11], 0 }
   0x3   :  { %17 = vsyncpa [#allocation14], 0 }
   0x4   :  { %18 = vsyncpa [#allocation6], 0  ;;  %s413_s30 = smov [#allocation7]   ;;  %s414_s11 = smov [#allocation10]  }
   0x5   :  { %s43_s10 = sshll.u32 %s413_s30, 4  ;;  %s69_s12 = sshll.u32 %s414_s11, 4  ;;  %s44_s10 = int_to_ptr.vmem [resolvable:$true] %s43_s10  ;;  %s70_s12 = int_to_ptr.vmem [resolvable:$true] %s69_s12 }
   0x6   :  { %s249_s15 = scalar_lea.hbm %s577_s1, 256 }
   0x7   :  { %p250_p0 = scmp.ne.s32.totalorder %s577_s1, %s249_s15  ;;  %p253_p1 = scmp.lt.u32.totalorder %s249_s15, %s577_s1 }
   0x9   :  { %p255_p2 = pnand %p253_p1, %p250_p0 }
   0xb   :  { %258 = shalt.err (!%p255_p2)
}
   0xc   :  { %s259_s20 = scalar_lea.vmem %s44_s10, 256  ;;  %p264_p4 = scmp.lt.s32.totalorder %s44_s10, %s44_s10 }
   0xd   :  { %p260_p3 = scmp.ne.s32.totalorder %s44_s10, %s259_s20  ;;  %p265_p5 = scmp.lt.s32.totalorder %s259_s20, %s259_s20 }
   0xf   :  { %p266_p6 = por %p265_p5, %p264_p4 }
  0x11   :  { %p267_p7 = pnand %p266_p6, %p260_p3 }
  0x13   :  { %270 = shalt.err (!%p267_p7)
}
  0x14   :  { %46 = dma.hbm_to_vmem [thread:$0]  %s577_s1, 256, %s44_s10, [#allocation8]  }
  0x15   :  { %s271_s25 = scalar_lea.hbm %s580_s4, 128 }
  0x16   :  { %p272_p8 = scmp.ne.s32.totalorder %s580_s4, %s271_s25  ;;  %p275_p9 = scmp.lt.u32.totalorder %s271_s25, %s580_s4 }
  0x18   :  { %p277_p10 = pnand %p275_p9, %p272_p8 }
  0x1a   :  { %280 = shalt.err (!%p277_p10)
}
  0x1b   :  { %s281_s30 = scalar_lea.vmem %s70_s12, 128  ;;  %p286_p12 = scmp.lt.s32.totalorder %s70_s12, %s70_s12 }
  0x1c   :  { %p282_p11 = scmp.ne.s32.totalorder %s70_s12, %s281_s30  ;;  %p287_p13 = scmp.lt.s32.totalorder %s281_s30, %s281_s30 }
  0x1e   :  { %p288_p0 = por %p287_p13, %p286_p12 }
  0x20   :  { %p289_p1 = pnand %p288_p0, %p282_p11 }
  0x22   :  { %292 = shalt.err (!%p289_p1)
}
  0x23   :  { %72 = dma.hbm_to_vmem [thread:$0]  %s580_s4, 128, %s70_s12, [#allocation11]  }
  0x24   :  { %s415_s11 = smov [#allocation4]   ;;  %s416_s14 = smov [#allocation9]  }
  0x25   :  { %s29_s13 = sshll.u32 %s415_s11, 4  ;;  %s57_s15 = sshll.u32 %s416_s14, 4  ;;  %s30_s13 = int_to_ptr.vmem [resolvable:$true] %s29_s13  ;;  %s58_s15 = int_to_ptr.vmem [resolvable:$true] %s57_s15 }
  0x26   :  { %s293_s18 = scalar_lea.hbm %s576_s0, 256 }
  0x27   :  { %p294_p2 = scmp.ne.s32.totalorder %s576_s0, %s293_s18  ;;  %p297_p3 = scmp.lt.u32.totalorder %s293_s18, %s576_s0 }
  0x29   :  { %p299_p4 = pnand %p297_p3, %p294_p2 }
  0x2b   :  { %302 = shalt.err (!%p299_p4)
}
  0x2c   :  { %s303_s4 = scalar_lea.vmem %s30_s13, 256  ;;  %p308_p6 = scmp.lt.s32.totalorder %s30_s13, %s30_s13 }
  0x2d   :  { %p304_p5 = scmp.ne.s32.totalorder %s30_s13, %s303_s4  ;;  %p309_p7 = scmp.lt.s32.totalorder %s303_s4, %s303_s4 }
  0x2f   :  { %p310_p8 = por %p309_p7, %p308_p6 }
  0x31   :  { %p311_p9 = pnand %p310_p8, %p304_p5 }
  0x33   :  { %314 = shalt.err (!%p311_p9)
}
  0x34   :  { %32 = dma.hbm_to_vmem [thread:$0]  %s576_s0, 256, %s30_s13, [#allocation5]  }
  0x35   :  { %s315_s26 = scalar_lea.hbm %s578_s2, 256 }
  0x36   :  { %p316_p10 = scmp.ne.s32.totalorder %s578_s2, %s315_s26  ;;  %p319_p11 = scmp.lt.u32.totalorder %s315_s26, %s578_s2 }
  0x38   :  { %p321_p12 = pnand %p319_p11, %p316_p10 }
  0x3a   :  { %324 = shalt.err (!%p321_p12)
}
  0x3b   :  { %s325_s1 = scalar_lea.vmem %s58_s15, 256  ;;  %p330_p0 = scmp.lt.s32.totalorder %s58_s15, %s58_s15 }
  0x3c   :  { %p326_p13 = scmp.ne.s32.totalorder %s58_s15, %s325_s1  ;;  %p331_p1 = scmp.lt.s32.totalorder %s325_s1, %s325_s1 }
  0x3e   :  { %p332_p2 = por %p331_p1, %p330_p0 }
  0x40   :  { %p333_p3 = pnand %p332_p2, %p326_p13 }
  0x42   :  { %336 = shalt.err (!%p333_p3)
}
  0x43   :  { %60 = dma.hbm_to_vmem [thread:$0]  %s578_s2, 256, %s58_s15, [#allocation8]  }
  0x44   :  { %s417_s11 = smov [#allocation12]   ;;  %s418_s14 = smov [#allocation13]  }
  0x45   :  { %s81_s13 = sshll.u32 %s417_s11, 4  ;;  %s93_s16 = sshll.u32 %s418_s14, 4  ;;  %s82_s13 = int_to_ptr.vmem [resolvable:$true] %s81_s13  ;;  %s94_s16 = int_to_ptr.vmem [resolvable:$true] %s93_s16 }
  0x46   :  { %s337_s19 = scalar_lea.hbm %s582_s6, 128 }
  0x47   :  { %p338_p4 = scmp.ne.s32.totalorder %s582_s6, %s337_s19  ;;  %p341_p5 = scmp.lt.u32.totalorder %s337_s19, %s582_s6 }
  0x49   :  { %p343_p6 = pnand %p341_p5, %p338_p4 }
  0x4b   :  { %346 = shalt.err (!%p343_p6)
}
  0x4c   :  { %s347_s2 = scalar_lea.vmem %s82_s13, 128  ;;  %p352_p8 = scmp.lt.s32.totalorder %s82_s13, %s82_s13 }
  0x4d   :  { %p348_p7 = scmp.ne.s32.totalorder %s82_s13, %s347_s2  ;;  %p353_p9 = scmp.lt.s32.totalorder %s347_s2, %s347_s2 }
  0x4f   :  { %p354_p10 = por %p353_p9, %p352_p8 }
  0x51   :  { %p355_p11 = pnand %p354_p10, %p348_p7 }
  0x53   :  { %358 = shalt.err (!%p355_p11)
}
  0x54   :  { %84 = dma.hbm_to_vmem [thread:$0]  %s582_s6, 128, %s82_s13, [#allocation11]  }
  0x55   :  { %s359_s25 = scalar_lea.hbm %s584_s8, 128 }
  0x56   :  { %p360_p12 = scmp.ne.s32.totalorder %s584_s8, %s359_s25  ;;  %p363_p13 = scmp.lt.u32.totalorder %s359_s25, %s584_s8 }
  0x58   :  { %p365_p0 = pnand %p363_p13, %p360_p12 }
  0x5a   :  { %368 = shalt.err (!%p365_p0)
}
  0x5b   :  { %s369_s30 = scalar_lea.vmem %s94_s16, 128  ;;  %p374_p2 = scmp.lt.s32.totalorder %s94_s16, %s94_s16 }
  0x5c   :  { %p370_p1 = scmp.ne.s32.totalorder %s94_s16, %s369_s30  ;;  %p375_p3 = scmp.lt.s32.totalorder %s369_s30, %s369_s30 }
  0x5e   :  { %p376_p4 = por %p375_p3, %p374_p2 }
  0x60   :  { %p377_p5 = pnand %p376_p4, %p370_p1 }
  0x62   :  { %380 = shalt.err (!%p377_p5)
}
  0x63   :  { %96 = dma.hbm_to_vmem [thread:$0]  %s584_s8, 128, %s94_s16, [#allocation14]  }
  0x64   :  { %403 = dma.done.wait [#allocation5], 256  }
  0x65   :  { %404 = vsyncadd [#allocation5], 4294967040 }
  0x66   :  { %405 = dma.done.wait [#allocation8], 512  }
  0x67   :  { %406 = vsyncadd [#allocation8], 4294966784 }
  0x68   :  { %407 = dma.done.wait [#allocation11], 256  }
  0x69   :  { %408 = vsyncadd [#allocation11], 4294967040 }
  0x6a   :  { %409 = dma.done.wait [#allocation14], 128  }
  0x6b   :  { %410 = vsyncadd [#allocation14], 4294967168  ;;  %vm125_vm0 = vcmask 7168   ;;  %v419_v0 = vmov 0.0   ;;  %v166_v1 = vld [vmem:[#allocation9] sm:$0xff]  ;;  %v167_v2 = vld [vmem:[#allocation9 + $0x8] sm:$0xff]  ;;  %v128_v36 = vlaneseq }
  0x6c   :  { %126 = vst.msk [vmem:[#allocation2] sm:$0xff] %vm125_vm0, %v419_v0  ;;  %127 = vst.msk [vmem:[#allocation3] sm:$0xff] %vm125_vm0, %v419_v0  ;;  %v168_v3 = vld [vmem:[#allocation4] sm:$0xff]  ;;  %v169_v4 = vld [vmem:[#allocation4 + $0x8] sm:$0xff]  ;;  %vm146_vm1 = vcmask 261120   ;;  %vm136_vm2 = vcmask 64512  }
  0x6d   :  { %v170_v5 = vsub.f32 %v168_v3, %v166_v1  ;;  %v172_v6 = vld [vmem:[#allocation7] sm:$0xff]  ;;  %v173_v7 = vld [vmem:[#allocation7 + $0x8] sm:$0xff]  ;;  %v171_v8 = vsub.f32 %v169_v4, %v167_v2  ;;  %v153_v18 = vld [vmem:[#allocation13] sm:$0xff]  ;;  %v420_v35 = vmov 0   ;;  %v129_v37 = vand.u32 127, %v128_v36 }
  0x6e   :  { %v174_v9 = vsub.f32 %v172_v6, %v166_v1  ;;  %v175_v10 = vsub.f32 %v173_v7, %v167_v2  ;;  %v142_v11 = vld [vmem:[%s581_s5] sm:$0xff]  ;;  %v143_v12 = vld [vmem:[#allocation12] sm:$0xff]  ;;  %247 = vset.pattern.permute.xlu1 %v420_v35  ;;  %248 = vset.pattern.permute.xlu0 %v420_v35 }
  0x6f   :  { %v131_v13 = vld [vmem:[%s579_s3] sm:$0xff]  ;;  %v177_v14 = vmul.f32 %v170_v5, %v170_v5  ;;  %v144_v15 = vsub.f32 %v142_v11, %v143_v12  ;;  %v178_v19 = vmul.f32 %v171_v8, %v171_v8  ;;  %vm130_vm3 = vcmp.eq.s32.totalorder %v129_v37, 2  ;;  %s421_s3 = smov [#allocation15]  }
  0x70   :  { %v132_v16 = vld [vmem:[#allocation10] sm:$0xff]  ;;  %v189_v20 = vmul.f32 %v175_v10, %v175_v10  ;;  %v188_v22 = vmul.f32 %v174_v9, %v174_v9  ;;  %vm141_vm4 = vcmp.eq.s32.totalorder %v129_v37, 3  ;;  %vm151_vm5 = vcmp.eq.s32.totalorder %v129_v37, 4  ;;  %s226_s5 = sshll.u32 %s421_s3, 4  ;;  %s227_s5 = int_to_ptr.vmem [resolvable:$true] %s226_s5 }
  0x71   :  { %v152_v17 = vld [vmem:[%s583_s7] sm:$0xff]  ;;  %v133_v21 = vcvt.s32.f32 %v132_v16  ;;  %v145_v23 = vand.u32 2147483647, %v144_v15  ;;  %v180_v24 = vsel %vm146_vm1, %v178_v19, 0.0  ;;  %vm202_vm6 = vcmp.eq.s32.totalorder %v129_v37, 0  ;;  %s381_s7 = scalar_lea.vmem %s227_s5, 128  ;;  %p386_p7 = scmp.lt.s32.totalorder %s227_s5, %s227_s5 }
  0x72   :  { %v190_v25 = vsel %vm146_vm1, %v189_v20, 0.0  ;;  %v154_v27 = vsub.f32 %v152_v17, %v153_v18  ;;  %v181_v28 = vadd.f32 %v180_v24, %v177_v14  ;;  %vm210_vm7 = vcmp.eq.s32.totalorder %v129_v37, 1  ;;  %p382_p6 = scmp.ne.s32.totalorder %s227_s5, %s381_s7  ;;  %p387_p8 = scmp.lt.s32.totalorder %s381_s7, %s381_s7 }
  0x73   :  { %v134_v26 = vsub.f32 %v131_v13, %v133_v21  ;;  %v147_v29 = vsel %vm146_vm1, %v145_v23, 0.0  ;;  %v191_v31 = vadd.f32 %v190_v25, %v188_v22  ;;  %v176_v38 = vld [vmem:[#allocation2] sm:$0xff]  ;;  %v187_v42 = vld [vmem:[#allocation3] sm:$0xff] }
  0x74   :  { %148 = vadd.xlane.f32.xlu1 %v147_v29  ;;  %182 = vadd.xlane.f32.xlu0 %v181_v28  ;;  %v155_v33 = vand.u32 2147483647, %v154_v27  ;;  %p388_p9 = por %p387_p8, %p386_p7 }
  0x75   :  { %v135_v30 = vand.u32 2147483647, %v134_v26 }
  0x76   :  { %v156_v34 = vsel %vm146_vm1, %v155_v33, 0.0  ;;  %p389_p10 = pnand %p388_p9, %p382_p6 }
  0x77   :  { %v137_v32 = vsel %vm136_vm2, %v135_v30, 0.0 }
  0x78   :  { %138 = vadd.xlane.f32.xlu1 %v137_v32  ;;  %192 = vadd.xlane.f32.xlu0 %v191_v31 }
  0x7c   :  { %157 = vadd.xlane.f32.xlu0 %v156_v34 }
 0x101   :  { %v149_v39 = vpop.xlane.xlu1 %148  ;;  %v183_v40 = vpop.xlane.xlu0 %182 }
 0x102   :  { %v184_v41 = vadd.f32 %v183_v40, %v176_v38 }
 0x104   :  { %186 = vst.msk [vmem:[#allocation2] sm:$0xff] %vm125_vm0, %v184_v41 }
 0x105   :  { %v139_v43 = vpop.xlane.xlu1 %138  ;;  %v193_v44 = vpop.xlane.xlu0 %192 }
 0x106   :  { %v140_v45 = vsel %vm130_vm3, %v139_v43, 0.0  ;;  %v194_v46 = vadd.f32 %v193_v44, %v187_v42 }
 0x107   :  { %v150_v47 = vsel %vm141_vm4, %v149_v39, %v140_v45 }
 0x108   :  { %195 = vst.msk [vmem:[#allocation3] sm:$0xff] %vm125_vm0, %v194_v46 }
 0x109   :  { %v158_v48 = vpop.xlane.xlu0 %157 }
 0x10a   :  { %v159_v49 = vsel %vm151_vm5, %v158_v48, %v150_v47 }
 0x10b   :  { %v203_v50 = vld [vmem:[#allocation2] sm:$0xff]  ;;  %165 = vst.msk [vmem:[#allocation15] sm:$0xff] %vm136_vm2, %v159_v49 }
 0x10c   :  { %206 = vperm.xlu1 %247, %v203_v50  }
 0x10f   :  { %v211_v51 = vld [vmem:[#allocation3] sm:$0xff] }
 0x110   :  { %214 = vperm.xlu0 %248, %v211_v51  }
 0x112   :  { %v201_v53 = vld [vmem:[#allocation15] sm:$0xff] }
 0x18b   :  { %v207_v52 = vpop.permute.xlu1 %206 }
 0x18c   :  { %v209_v54 = vsel %vm202_vm6, %v207_v52, %v201_v53 }
 0x18f   :  { %v215_v55 = vpop.permute.xlu0 %214 }
 0x190   :  { %v217_v56 = vsel %vm210_vm7, %v215_v55, %v209_v54 }
 0x191   :  { %219 = vst.msk [vmem:[#allocation15] sm:$0xff] %vm136_vm2, %v217_v56 }
 0x192   :  { %392 = shalt.err (!%p389_p10)
}
 0x193   :  { %s393_s18 = scalar_lea.hbm %s585_s9, 128 }
 0x194   :  { %p394_p11 = scmp.ne.s32.totalorder %s585_s9, %s393_s18  ;;  %p397_p12 = scmp.lt.u32.totalorder %s393_s18, %s585_s9 }
 0x196   :  { %p399_p13 = pnand %p397_p12, %p394_p11 }
 0x198   :  { %402 = shalt.err (!%p399_p13)
}
 0x199   :  { %229 = dma.vmem_to_hbm [thread:$0]  %s227_s5, 128, %s585_s9, [#allocation6]  }
 0x19a   :  { %411 = dma.done.wait [#allocation6], 128  }
 0x19b   :  { %412 = vsyncadd [#allocation6], 4294967168 }
 0x19c   :  { %233 = vsyncpa [#allocation5], 1 }
 0x19d   :  { %234 = vsyncpa [#allocation8], 1 }
 0x19e   :  { %235 = vsyncpa [#allocation11], 1 }
 0x19f   :  { %236 = vsyncpa [#allocation14], 1 }
 0x1a0   :  { %237 = vsyncpa [#allocation6], 1 }

</bundles_post_ra>
